<compile_context>
chip_gen: v6e
topology: v6e:2x2x1
jax: 0.10.0
libtpu: 0.0.40
codegen_flags: <defaults>
</compile_context>

<pallas_src>
import functools

import jax
import jax.numpy as jnp
from jax.experimental import pallas as pl
from jax.experimental.pallas import tpu as pltpu

_LANE = 128
_NEG_BIG = -1e30   # Python float literal (NOT a jnp scalar -> no captured const).


def _round_up(x, m):
    return (x + m - 1) // m * m


def _cdiv(a, b):
    return (a + b - 1) // b


def _mlp_softmax_kernel(*refs, num_hidden, out_valid, has_mask, apply_softmax):
    """x@Win+b -> relu -> residual hidden layers -> logits -> masked softmax."""
    if has_mask:
        (x_ref, mask_ref, w_in_ref, b_in_ref, w_h_ref, b_h_ref,
         w_out_ref, b_out_ref, out_ref) = refs
    else:
        (x_ref, w_in_ref, b_in_ref, w_h_ref, b_h_ref,
         w_out_ref, b_out_ref, out_ref) = refs
        mask_ref = None

    # Input layer + ReLU (bf16 operands, f32 accumulation on the MXU).
    h = jnp.dot(x_ref[...], w_in_ref[...], preferred_element_type=jnp.float32)
    h = jnp.maximum(h + b_in_ref[...], 0.0)

    # Residual hidden layers: h = relu(h @ W + b + h).  Small fixed depth ->
    # keep unrolled.
    # TODO(synk): if num_hidden*h_pad^2 weights outgrow v7x's 64 MiB VMEM,
    # keep w_h in HBM (memory_space=pl.ANY) and double-buffer per-layer slices
    # with pltpu.make_async_copy (prefetch layer l+1 while computing layer l).
    for l in range(num_hidden):
        y = jnp.dot(h.astype(jnp.bfloat16), w_h_ref[l],
                    preferred_element_type=jnp.float32)
        h = jnp.maximum(y + b_h_ref[l] + h, 0.0)

    # Output layer.
    logits = jnp.dot(h.astype(jnp.bfloat16), w_out_ref[...],
                     preferred_element_type=jnp.float32) + b_out_ref[...]

    if not apply_softmax:
        # Critic head: raw linear output (padded columns sliced off in wrapper).
        out_ref[...] = logits
        return

    col = jax.lax.broadcasted_iota(jnp.int32, logits.shape, 1)
    if has_mask:
        # Per-row packed bitmask: bit j == 1  <=>  column j allowed.
        bits = mask_ref[...]                                     # (tb, 1) int32
        allowed = (jnp.right_shift(bits, jnp.minimum(col, 31)) & 1) == 1
        # Large finite negative (matches reference).  Note: a fully-masked row
        # yields a uniform distribution over its real columns (same as the
        # pure-JAX reference; the original -inf PyTorch version would NaN).
        logits = jnp.where(allowed, logits, _NEG_BIG)
    # Lane-padded columns get exactly zero probability.
    logits = jnp.where(col < out_valid, logits, -jnp.inf)

    m = jnp.max(logits, axis=1, keepdims=True)
    e = jnp.exp(logits - m)
    s = jnp.sum(e, axis=1, keepdims=True)
    # Exact reciprocal: rows must sum to 1 if downstream samples from them.
    out_ref[...] = e * pl.reciprocal(s, approx=False)


def _constraint_allowed(state):
    """Pure-JAX port of ForwardNet._apply_constraints.

    Returns a [B, 4] bool array; True == the column is allowed (mask == 1).
    Must be computed on the f32 state (NOT the bf16 kernel input): the
    round()*25 / *100 logic would be unreliable in bf16.
    """
    assignments = jnp.round(state[:, 9:11] * 25.0)
    trial = jnp.round(state[:, 13] * 100.0)
    a0, a1 = assignments[:, 0], assignments[:, 1]
    c0 = (a0 <= trial - 75.0) | (a1 <= trial - 75.0)
    c1 = (a0 >= 25.0) | (a1 <= trial - 75.0)
    c2 = (a1 >= 25.0) | (a0 <= trial - 75.0)
    c3 = (a0 >= 25.0) | (a1 >= 25.0)
    return ~jnp.stack([c0, c1, c2, c3], axis=1)


def prepare_params(params):
    """One-time parameter prep: lane-pad to 128 and cast matmul operands to
    bf16.  Call once and cache the result; forward_net reuses it so the
    per-call HBM traffic is just the pallas_call itself."""
    w_in, b_in, w_h, b_h, w_out, b_out = params
    f32, bf16 = jnp.float32, jnp.bfloat16
    in_size, hidden_size = w_in.shape
    num_hidden = w_h.shape[0]
    out_size = w_out.shape[1]
    in_pad = _round_up(in_size, _LANE)
    h_pad = _round_up(hidden_size, _LANE)
    out_pad = _round_up(out_size, _LANE)

    w_in_p = jnp.zeros((in_pad, h_pad), bf16).at[:in_size, :hidden_size].set(w_in.astype(bf16))
    b_in_p = jnp.zeros((1, h_pad), f32).at[:, :hidden_size].set(
        b_in.reshape(1, hidden_size).astype(f32))
    w_h_p = jnp.zeros((num_hidden, h_pad, h_pad), bf16).at[
        :, :hidden_size, :hidden_size].set(w_h.astype(bf16))
    b_h_p = jnp.zeros((num_hidden, 1, h_pad), f32).at[:, :, :hidden_size].set(
        b_h.reshape(num_hidden, 1, hidden_size).astype(f32))
    w_out_p = jnp.zeros((h_pad, out_pad), bf16).at[:hidden_size, :out_size].set(
        w_out.astype(bf16))
    b_out_p = jnp.zeros((1, out_pad), f32).at[:, :out_size].set(
        b_out.reshape(1, out_size).astype(f32))

    tensors = (w_in_p, b_in_p, w_h_p, b_h_p, w_out_p, b_out_p)
    meta = dict(in_size=in_size, hidden_size=hidden_size, num_hidden=num_hidden,
                out_size=out_size, in_pad=in_pad, h_pad=h_pad, out_pad=out_pad)
    return tensors, meta


def forward_net(x, prepped, *, is_test=False, critic=False, batch_tile=2048):
    """ForwardNet forward pass.  x: [B, input_size] (or [input_size]) float32.
    `prepped` is the cached output of prepare_params(params).

    For tiny per-call batches (e.g. single env steps) aggregate multiple steps
    into one call before worrying about kernel micro-optimizations — launch +
    wrapper overhead dominates below ~128 rows on all TPU generations."""
    tensors, meta = prepped
    w_in_p, b_in_p, w_h_p, b_h_p, w_out_p, b_out_p = tensors
    in_size, in_pad = meta["in_size"], meta["in_pad"]
    h_pad, out_pad = meta["h_pad"], meta["out_pad"]
    num_hidden, out_size = meta["num_hidden"], meta["out_size"]
    f32, bf16 = jnp.float32, jnp.bfloat16

    squeeze = x.ndim == 1
    if squeeze:
        x = x[None, :]
    x = x.astype(f32)
    batch = x.shape[0]

    # Batch tiling: always >= 2 grid steps so dimension_semantics=("parallel",)
    # actually shards across v7x's two TensorCores (cheap no-op on single-core
    # v5e/v6e).  Default 2048-row tiles amortize the ~0.35us/step overhead on
    # v5e/v6e's 128 MiB VMEM; pass batch_tile~512 on v7x (64 MiB VMEM).
    n_steps = max(2, _cdiv(batch, batch_tile))
    tb = max(8, _round_up(_cdiv(batch, n_steps), 8))   # sublane-aligned tile
    b_pad = tb * n_steps
    grid = (n_steps,)

    # Lane-padded (128) input features -> lane-dense x tile / first matmul K.
    x_p = jnp.zeros((b_pad, in_pad), bf16).at[:batch, :in_size].set(x.astype(bf16))

    def batch_spec(cols):
        return pl.BlockSpec((tb, cols), lambda i: (i, 0))

    def const2(shape):
        return pl.BlockSpec(shape, lambda i: (0, 0))

    def const3(shape):
        return pl.BlockSpec(shape, lambda i: (0, 0, 0))

    has_mask = bool(is_test) and not critic
    inputs = [x_p]
    in_specs = [batch_spec(in_pad)]
    if has_mask:
        allowed = _constraint_allowed(x)                      # [B, 4] bool (f32 x)
        bits = jnp.sum(allowed.astype(jnp.int32)
                       * jnp.array([1, 2, 4, 8], jnp.int32), axis=1)
        # Packed per-row bitmask (b_pad, 1) int32 instead of a (b_pad, 128)
        # f32 tile.  Pad rows -> all-allowed so their math stays finite
        # (they are sliced off anyway).
        bits_p = jnp.full((b_pad, 1), 15, jnp.int32).at[:batch, 0].set(bits)
        inputs.append(bits_p)
        in_specs.append(batch_spec(1))
    inputs += [w_in_p, b_in_p, w_h_p, b_h_p, w_out_p, b_out_p]
    in_specs += [
        const2((in_pad, h_pad)), const2((1, h_pad)),
        const3((num_hidden, h_pad, h_pad)), const3((num_hidden, 1, h_pad)),
        const2((h_pad, out_pad)), const2((1, out_pad)),
    ]

    # VMEM budget: double-buffered windows, clamped to a v7x-portable cap
    # (64 MiB physical there vs 128 MiB on v5e/v6e).
    # NOTE(v7x): weights with constant index_maps could be single-buffered via
    # pipeline_mode=pl.Buffered(1) to halve their footprint; left at the
    # default here for maximum portability (they are tiny at these shapes).
    weight_bytes = sum(int(a.size) * a.dtype.itemsize
                       for a in (w_in_p, b_in_p, w_h_p, b_h_p, w_out_p, b_out_p))
    tile_bytes = tb * in_pad * 2 + tb * out_pad * 4 + (tb * 4 if has_mask else 0)
    vmem_limit = min(56 << 20, 2 * (weight_bytes + tile_bytes) + (8 << 20))

    flops = 2 * b_pad * (in_pad * h_pad + num_hidden * h_pad * h_pad + h_pad * out_pad)
    bytes_accessed = sum(int(a.size) * a.dtype.itemsize for a in inputs) + b_pad * out_pad * 4
    cost = pl.CostEstimate(flops=flops, transcendentals=b_pad * out_pad,
                           bytes_accessed=bytes_accessed)

    out_p = pl.pallas_call(
        functools.partial(_mlp_softmax_kernel, num_hidden=num_hidden,
                          out_valid=out_size, has_mask=has_mask,
                          apply_softmax=not critic),
        grid=grid,
        in_specs=in_specs,
        out_specs=batch_spec(out_pad),
        out_shape=jax.ShapeDtypeStruct((b_pad, out_pad), f32),
        compiler_params=pltpu.CompilerParams(
            dimension_semantics=("parallel",),
            vmem_limit_bytes=vmem_limit),
        cost_estimate=cost,
    )(*inputs)

    out = out_p[:batch, :out_size]
    return out[0] if squeeze else out


def init_params(key, input_size, hidden_layers, hidden_size, output_size):
    """Deterministic synthetic parameters (PyTorch Linear shapes, transposed)."""
    ks = jax.random.split(key, 6)
    scale = 0.1
    w_in = scale * jax.random.normal(ks[0], (input_size, hidden_size), jnp.float32)
    b_in = scale * jax.random.normal(ks[1], (1, hidden_size), jnp.float32)
    w_h = scale * jax.random.normal(ks[2], (hidden_layers, hidden_size, hidden_size), jnp.float32)
    b_h = scale * jax.random.normal(ks[3], (hidden_layers, 1, hidden_size), jnp.float32)
    w_out = scale * jax.random.normal(ks[4], (hidden_size, output_size), jnp.float32)
    b_out = scale * jax.random.normal(ks[5], (1, output_size), jnp.float32)
    return (w_in, b_in, w_h, b_h, w_out, b_out)


def _reference(x, params, *, is_test=False, critic=False):
    """Pure-JAX reference matching the kernel's bf16-operand / f32-acc math."""
    w_in, b_in, w_h, b_h, w_out, b_out = params

    def mm(a, w):
        return jnp.dot(a.astype(jnp.bfloat16), w.astype(jnp.bfloat16),
                       preferred_element_type=jnp.float32)

    h = jnp.maximum(mm(x, w_in) + b_in.reshape(1, -1), 0.0)
    for l in range(w_h.shape[0]):
        h = jnp.maximum(mm(h, w_h[l]) + b_h[l].reshape(1, -1) + h, 0.0)
    logits = mm(h, w_out) + b_out.reshape(1, -1)
    if critic:
        return logits
    if is_test:
        allowed = _constraint_allowed(x)
        logits = jnp.where(allowed, logits, _NEG_BIG)
    return jax.nn.softmax(logits, axis=1)


if __name__ == "__main__":
    key = jax.random.PRNGKey(0)
    k_x, k_p = jax.random.split(key)

    batch = 8
    input_size = 16       # >= 14 so _apply_constraints indices are valid
    hidden_layers = 2
    hidden_size = 32
    output_size = 4       # action head; constraint mask has 4 entries

    x = jax.random.uniform(k_x, (batch, input_size), jnp.float32)
    params = init_params(k_p, input_size, hidden_layers, hidden_size, output_size)
    prepped = prepare_params(params)   # one-time prep; reused across calls

    # Training mode (all-ones mask elided at trace time).
    out = jax.block_until_ready(forward_net(x, prepped, is_test=False))
    ref = _reference(x, params, is_test=False)
    assert out.shape == (batch, output_size)
    assert jnp.allclose(out, ref, atol=2e-2, rtol=2e-2)
    assert jnp.allclose(jnp.sum(out, axis=1), 1.0, atol=1e-3)

    # Test mode (constraint mask active, packed to a per-row int32 bitmask).
    out_t = jax.block_until_ready(forward_net(x, prepped, is_test=True))
    ref_t = _reference(x, params, is_test=True)
    assert out_t.shape == (batch, output_size)
    assert jnp.allclose(out_t, ref_t, atol=2e-2, rtol=2e-2)
    assert jnp.allclose(jnp.sum(out_t, axis=1), 1.0, atol=1e-3)

    # Critic head (raw linear output, no mask / softmax).
    out_c = jax.block_until_ready(forward_net(x, prepped, critic=True))
    ref_c = _reference(x, params, critic=True)
    assert out_c.shape == (batch, output_size)
    assert jnp.allclose(out_c, ref_c, atol=5e-2, rtol=5e-2)

    print("KERNEL_OK")
</pallas_src>

<mosaic_0001>
module attributes {stable_mosaic.version = 11 : i64} {
  func.func @_mlp_softmax_kernel(%arg0: i32, %arg1: memref<8x128xbf16, #tpu.memory_space<vmem>>, %arg2: memref<128x128xbf16, #tpu.memory_space<vmem>>, %arg3: memref<1x128xf32, #tpu.memory_space<vmem>>, %arg4: memref<2x128x128xbf16, #tpu.memory_space<vmem>>, %arg5: memref<2x1x128xf32, #tpu.memory_space<vmem>>, %arg6: memref<128x128xbf16, #tpu.memory_space<vmem>>, %arg7: memref<1x128xf32, #tpu.memory_space<vmem>>, %arg8: memref<8x128xf32, #tpu.memory_space<vmem>>) attributes {dimension_semantics = [#tpu.dimension_semantics<parallel>], iteration_bounds = array<i64: 2>, scalar_prefetch = 0 : i64, scratch_operands = 0 : i64, tpu.core_type = #tpu.core_type<tc>, window_params = [{transform_indices = @transform_0, window_bounds = array<i64: 8, 128>}, {pipeline_mode = #tpu.pipeline_mode<synchronous>, transform_indices = @transform_1, window_bounds = array<i64: 128, 128>}, {pipeline_mode = #tpu.pipeline_mode<synchronous>, transform_indices = @transform_2, window_bounds = array<i64: 1, 128>}, {pipeline_mode = #tpu.pipeline_mode<synchronous>, transform_indices = @transform_3, window_bounds = array<i64: 2, 128, 128>}, {pipeline_mode = #tpu.pipeline_mode<synchronous>, transform_indices = @transform_4, window_bounds = array<i64: 2, 1, 128>}, {pipeline_mode = #tpu.pipeline_mode<synchronous>, transform_indices = @transform_5, window_bounds = array<i64: 128, 128>}, {pipeline_mode = #tpu.pipeline_mode<synchronous>, transform_indices = @transform_6, window_bounds = array<i64: 1, 128>}, {transform_indices = @transform_7, window_bounds = array<i64: 8, 128>}]} {
    %c0 = arith.constant 0 : index
    %c0_0 = arith.constant 0 : index
    %0 = vector.load %arg1[%c0, %c0_0] : memref<8x128xbf16, #tpu.memory_space<vmem>>, vector<8x128xbf16>
    %c0_1 = arith.constant 0 : index
    %c0_2 = arith.constant 0 : index
    %1 = vector.load %arg2[%c0_1, %c0_2] : memref<128x128xbf16, #tpu.memory_space<vmem>>, vector<128x128xbf16>
    %cst = arith.constant dense<0.000000e+00> : vector<8x128xf32>
    %2 = tpu.matmul %0, %1, %cst {dimension_numbers = #tpu.dot_dimension_numbers<[1], [0], [0], [1], [0, 0, 1, 1], [], []>} : vector<8x128xbf16>, vector<128x128xbf16>, vector<8x128xf32> -> vector<8x128xf32>
    %c0_3 = arith.constant 0 : index
    %c0_4 = arith.constant 0 : index
    %3 = vector.load %arg3[%c0_3, %c0_4] : memref<1x128xf32, #tpu.memory_space<vmem>>, vector<1x128xf32>
    %4 = vector.broadcast %3 : vector<1x128xf32> to vector<8x128xf32>
    %5 = arith.addf %2, %4 : vector<8x128xf32>
    %cst_5 = arith.constant 0.000000e+00 : f32
    %6 = vector.broadcast %cst_5 : f32 to vector<8x128xf32>
    %7 = arith.maximumf %5, %6 : vector<8x128xf32>
    %8 = arith.truncf %7 : vector<8x128xf32> to vector<8x128xbf16>
    %c0_6 = arith.constant 0 : index
    %c0_7 = arith.constant 0 : index
    %c0_8 = arith.constant 0 : index
    %9 = vector.load %arg4[%c0_6, %c0_7, %c0_8] : memref<2x128x128xbf16, #tpu.memory_space<vmem>>, vector<1x128x128xbf16>
    %10 = vector.shape_cast %9 : vector<1x128x128xbf16> to vector<128x128xbf16>
    %cst_9 = arith.constant dense<0.000000e+00> : vector<8x128xf32>
    %11 = tpu.matmul %8, %10, %cst_9 {dimension_numbers = #tpu.dot_dimension_numbers<[1], [0], [0], [1], [0, 0, 1, 1], [], []>} : vector<8x128xbf16>, vector<128x128xbf16>, vector<8x128xf32> -> vector<8x128xf32>
    %c0_10 = arith.constant 0 : index
    %c0_11 = arith.constant 0 : index
    %c0_12 = arith.constant 0 : index
    %12 = vector.load %arg5[%c0_10, %c0_11, %c0_12] : memref<2x1x128xf32, #tpu.memory_space<vmem>>, vector<1x1x128xf32>
    %13 = vector.shape_cast %12 : vector<1x1x128xf32> to vector<1x128xf32>
    %14 = vector.broadcast %13 : vector<1x128xf32> to vector<8x128xf32>
    %15 = arith.addf %11, %14 : vector<8x128xf32>
    %16 = arith.addf %15, %7 : vector<8x128xf32>
    %cst_13 = arith.constant 0.000000e+00 : f32
    %17 = vector.broadcast %cst_13 : f32 to vector<8x128xf32>
    %18 = arith.maximumf %16, %17 : vector<8x128xf32>
    %19 = arith.truncf %18 : vector<8x128xf32> to vector<8x128xbf16>
    %c1 = arith.constant 1 : index
    %c0_14 = arith.constant 0 : index
    %c0_15 = arith.constant 0 : index
    %20 = vector.load %arg4[%c1, %c0_14, %c0_15] : memref<2x128x128xbf16, #tpu.memory_space<vmem>>, vector<1x128x128xbf16>
    %21 = vector.shape_cast %20 : vector<1x128x128xbf16> to vector<128x128xbf16>
    %cst_16 = arith.constant dense<0.000000e+00> : vector<8x128xf32>
    %22 = tpu.matmul %19, %21, %cst_16 {dimension_numbers = #tpu.dot_dimension_numbers<[1], [0], [0], [1], [0, 0, 1, 1], [], []>} : vector<8x128xbf16>, vector<128x128xbf16>, vector<8x128xf32> -> vector<8x128xf32>
    %c1_17 = arith.constant 1 : index
    %c0_18 = arith.constant 0 : index
    %c0_19 = arith.constant 0 : index
    %23 = vector.load %arg5[%c1_17, %c0_18, %c0_19] : memref<2x1x128xf32, #tpu.memory_space<vmem>>, vector<1x1x128xf32>
    %24 = vector.shape_cast %23 : vector<1x1x128xf32> to vector<1x128xf32>
    %25 = vector.broadcast %24 : vector<1x128xf32> to vector<8x128xf32>
    %26 = arith.addf %22, %25 : vector<8x128xf32>
    %27 = arith.addf %26, %18 : vector<8x128xf32>
    %cst_20 = arith.constant 0.000000e+00 : f32
    %28 = vector.broadcast %cst_20 : f32 to vector<8x128xf32>
    %29 = arith.maximumf %27, %28 : vector<8x128xf32>
    %30 = arith.truncf %29 : vector<8x128xf32> to vector<8x128xbf16>
    %c0_21 = arith.constant 0 : index
    %c0_22 = arith.constant 0 : index
    %31 = vector.load %arg6[%c0_21, %c0_22] : memref<128x128xbf16, #tpu.memory_space<vmem>>, vector<128x128xbf16>
    %cst_23 = arith.constant dense<0.000000e+00> : vector<8x128xf32>
    %32 = tpu.matmul %30, %31, %cst_23 {dimension_numbers = #tpu.dot_dimension_numbers<[1], [0], [0], [1], [0, 0, 1, 1], [], []>} : vector<8x128xbf16>, vector<128x128xbf16>, vector<8x128xf32> -> vector<8x128xf32>
    %c0_24 = arith.constant 0 : index
    %c0_25 = arith.constant 0 : index
    %33 = vector.load %arg7[%c0_24, %c0_25] : memref<1x128xf32, #tpu.memory_space<vmem>>, vector<1x128xf32>
    %34 = vector.broadcast %33 : vector<1x128xf32> to vector<8x128xf32>
    %35 = arith.addf %32, %34 : vector<8x128xf32>
    %36 = tpu.iota {dimensions = array<i32: 1>} : vector<8x128xi32>
    %c4_i32 = arith.constant 4 : i32
    %37 = vector.broadcast %c4_i32 : i32 to vector<8x128xi32>
    %38 = arith.cmpi slt, %36, %37 : vector<8x128xi32>
    %cst_26 = arith.constant 0xFF800000 : f32
    %39 = vector.broadcast %cst_26 : f32 to vector<8x128xf32>
    %40 = arith.select %38, %35, %39 : vector<8x128xi1>, vector<8x128xf32>
    %cst_27 = arith.constant dense<0xFF800000> : vector<8xf32>
    %41 = vector.multi_reduction <maximumf>, %40, %cst_27 [1] : vector<8x128xf32> to vector<8xf32>
    %42 = vector.shape_cast %41 : vector<8xf32> to vector<8x1xf32>
    %43 = vector.broadcast %42 : vector<8x1xf32> to vector<8x128xf32>
    %44 = arith.subf %40, %43 : vector<8x128xf32>
    %45 = math.exp %44 : vector<8x128xf32>
    %cst_28 = arith.constant dense<0.000000e+00> : vector<8xf32>
    %46 = vector.multi_reduction <add>, %45, %cst_28 [1] : vector<8x128xf32> to vector<8xf32>
    %47 = vector.shape_cast %46 : vector<8xf32> to vector<8x1xf32>
    %48 = tpu.reciprocal %47 : vector<8x1xf32> -> vector<8x1xf32>
    %49 = vector.broadcast %48 : vector<8x1xf32> to vector<8x128xf32>
    %50 = arith.mulf %45, %49 : vector<8x128xf32>
    %c0_29 = arith.constant 0 : index
    %c0_30 = arith.constant 0 : index
    %51 = vector.load %arg8[%c0_29, %c0_30] : memref<8x128xf32, #tpu.memory_space<vmem>>, vector<8x128xf32>
    tpu.vector_store %arg8[%c0_29, %c0_30], %50 {strides = array<i32>} : memref<8x128xf32, #tpu.memory_space<vmem>>, vector<8x128xf32>,
    return
  }
  func.func @transform_0(%arg0: i32) -> (i32, i32) {
    %c0_i32 = arith.constant 0 : i32
    %c0_i32_0 = arith.constant 0 : i32
    return %arg0, %c0_i32 : i32, i32
  }
  func.func @transform_1(%arg0: i32) -> (i32, i32) {
    %c0_i32 = arith.constant 0 : i32
    %c0_i32_0 = arith.constant 0 : i32
    %c0_i32_1 = arith.constant 0 : i32
    return %c0_i32, %c0_i32_0 : i32, i32
  }
  func.func @transform_2(%arg0: i32) -> (i32, i32) {
    %c0_i32 = arith.constant 0 : i32
    %c0_i32_0 = arith.constant 0 : i32
    %c0_i32_1 = arith.constant 0 : i32
    return %c0_i32, %c0_i32_0 : i32, i32
  }
  func.func @transform_3(%arg0: i32) -> (i32, i32, i32) {
    %c0_i32 = arith.constant 0 : i32
    %c0_i32_0 = arith.constant 0 : i32
    %c0_i32_1 = arith.constant 0 : i32
    %c0_i32_2 = arith.constant 0 : i32
    return %c0_i32, %c0_i32_0, %c0_i32_1 : i32, i32, i32
  }
  func.func @transform_4(%arg0: i32) -> (i32, i32, i32) {
    %c0_i32 = arith.constant 0 : i32
    %c0_i32_0 = arith.constant 0 : i32
    %c0_i32_1 = arith.constant 0 : i32
    %c0_i32_2 = arith.constant 0 : i32
    return %c0_i32, %c0_i32_0, %c0_i32_1 : i32, i32, i32
  }
  func.func @transform_5(%arg0: i32) -> (i32, i32) {
    %c0_i32 = arith.constant 0 : i32
    %c0_i32_0 = arith.constant 0 : i32
    %c0_i32_1 = arith.constant 0 : i32
    return %c0_i32, %c0_i32_0 : i32, i32
  }
  func.func @transform_6(%arg0: i32) -> (i32, i32) {
    %c0_i32 = arith.constant 0 : i32
    %c0_i32_0 = arith.constant 0 : i32
    %c0_i32_1 = arith.constant 0 : i32
    return %c0_i32, %c0_i32_0 : i32, i32
  }
  func.func @transform_7(%arg0: i32) -> (i32, i32) {
    %c0_i32 = arith.constant 0 : i32
    %c0_i32_0 = arith.constant 0 : i32
    return %arg0, %c0_i32 : i32, i32
  }
}

</mosaic_0001>

<bundles_post_ra>
// kernel: tpu_custom_call.1
= control target key start
LH: loop header
LB: loop body
LE: loop exit
PB: predicated region body
PF: predicated region fallthrough
CT: control target
= control target key end

     0   :  { %s1671_s0 = inlined_call_operand.hbm [shape: bf16[16,128], index: 0, kind: input, shape index: {}]   ;;  %s1672_s1 = inlined_call_operand.hbm [shape: bf16[128,128], index: 1, kind: input, shape index: {}]   ;;  %s1673_s2 = inlined_call_operand.vmem [shape: f32[1,128], index: 2, kind: input, shape index: {}]   ;;  %s1674_s3 = inlined_call_operand.hbm [shape: bf16[2,128,128], index: 3, kind: input, shape index: {}]   ;;  %s1675_s4 = inlined_call_operand.vmem [shape: f32[2,1,128], index: 4, kind: input, shape index: {}]   ;;  %s1676_s5 = inlined_call_operand.hbm [shape: bf16[128,128], index: 5, kind: input, shape index: {}]   ;;  %s1677_s6 = inlined_call_operand.vmem [shape: f32[1,128], index: 6, kind: input, shape index: {}]   ;;  %s1678_s7 = inlined_call_operand.hbm [shape: f32[16,128], index: 7, kind: output, shape index: {}]  }
   0x1   :  { %1683 = sst [smem:[#allocation15_spill]] %s1672_s1 }
   0x2   :  { %1684 = sst [smem:[#allocation16_spill]] %s1674_s3 }
   0x3   :  { %12 = vsyncpa [#allocation3], 0 }
   0x4   :  { %14 = vsyncpa [#allocation3 + $0x1], 0 }
   0x5   :  { %15 = vsyncpa [#allocation6], 0 }
   0x6   :  { %16 = vsyncpa [#allocation9], 0 }
   0x7   :  { %17 = vsyncpa [#allocation4], 0 }
   0x8   :  { %19 = vsyncpa [#allocation4 + $0x1], 0  ;;  %s1438_s24 = smov 0   ;;  %s1440_s25 = smov 0  }
   0x9   :  { %s1442_s26 = smov 0   ;;  %s1444_s27 = smov 0  }
   0xa LB: > { %s1459_s28 = sadd.s32 4294967295, %s1387_s27   ;;  %s921_s29 = sadd.s32 4294967294, %s1387_s27   ;;  %s1387_s27 = sphi %s1444_s27, %s1706_s27   ;;  %s1383_s26 = sphi %s1442_s26, %s1705_s26   ;;  %s1379_s25 = sphi %s1440_s25, %s1704_s25   ;;  %s1375_s24 = sphi %s1438_s24, %s1703_s24  }
   0xb   : > { %p45_p0 = scmp.ne.s32.totalorder %s1379_s25, %s1375_s24  ;;  %p1679_p1 = scmp.eq.s32.totalorder %s1459_s28, 0 }
   0xc   : > { %p201_p3 = scmp.eq.s32.totalorder %s921_s29, 1  ;;  %p922_p5 = scmp.ge.s32.totalorder %s1387_s27, 1 }
   0xd   : > { %p1468_p4 = por %p1679_p1, %p45_p0  ;;  %p208_p7 = scmp.lt.s32.totalorder %s1387_s27, 3 }
   0xe   : > { %p1473_p6 = por %p201_p3, %p45_p0  ;;  %s1389_s10 = smov [#allocation5]  }
   0xf   : > { %s1685_s30 = scalar_select %p1468_p4, 1, 0 }
  0x10   : > { %s1686_s8 = scalar_select %p1473_p6, 1, 0 }
  0x11   : > { %p1478_p8 = pnand %p922_p5, %p208_p7  ;;  %s220_s11 = sshll.u32 %s1389_s10, 4  ;;  %s221_s11 = int_to_ptr.vmem [resolvable:$true] %s220_s11 }
  0x12   : > { %s1390_s13 = smov [#allocation7]   ;;  %s1391_s15 = smov [#allocation8]  }
  0x13   : > { %s1687_s9 = scalar_select %p1478_p8, 1, 0 }
  0x14   : > { %p1108_p9 = pneg %p1478_p8  ;;  %s236_s14 = sshll.u32 %s1390_s13, 4  ;;  %s237_s14 = int_to_ptr.vmem [resolvable:$true] %s236_s14 }
  0x15   : > { %s252_s16 = sshll.u32 %s1391_s15, 4  ;;  %s1220_s17 = scalar_lea.vmem %s221_s11, 1024  ;;  %s253_s16 = int_to_ptr.vmem [resolvable:$true] %s252_s16 }
  0x16   : > { %p1487_p11 = pnand %p1108_p9, %p1679_p1  ;;  %p1221_p13 = scmp.ne.s32.totalorder %s221_s11, %s1220_s17 }
  0x17   : > { %p1228_p5 = scmp.lt.s32.totalorder %s221_s11, %s221_s11  ;;  %p1229_p7 = scmp.lt.s32.totalorder %s1220_s17, %s1220_s17 }
  0x18   : > { %p1211_p12 = pneg %p1487_p11 }
  0x19   : > { %p1230_p9 = por %p1229_p7, %p1228_p5 }
  0x1a   : > { %p1223_p0 = pnand %p1221_p13, %p1211_p12 }
  0x1c   : > { %p1224_p3 = pneg %p1223_p0 }
  0x1e   : > { %p1231_p10 = pnand %p1230_p9, %p1224_p3 }
  0x20   : > { %1234 = shalt.err (!%p1231_p10)
}
  0x21   : > { %s1392_s18 = smov 64   ;;  %s1393_s19 = smov 4  }
  0x22   : > { %s1689_s1 = sld [smem:[#allocation15_spill]]  ;;  %s1246_s22 = scalar_lea.vmem %s237_s14, 2048 }
  0x23   : > { %p1247_p1 = scmp.ne.s32.totalorder %s237_s14, %s1246_s22  ;;  %p1254_p2 = scmp.lt.s32.totalorder %s237_s14, %s237_s14 }
  0x24   : > { %p1255_p6 = scmp.lt.s32.totalorder %s1246_s22, %s1246_s22 }
  0x25   : > { %p1249_p13 = pnand %p1247_p1, %p1211_p12 }
  0x26   : > { %p1256_p5 = por %p1255_p6, %p1254_p2 }
  0x27   : > { %p1250_p0 = pneg %p1249_p13 }
  0x28   : > { %1111 = dma.hbm_to_vmem [thread:$0]  (!%p1487_p11), %s1689_s1, 1024, %s221_s11, [#allocation6], %s1392_s18, %s1392_s18, %s1393_s19  }
  0x29   : > { %p1257_p3 = pnand %p1256_p5, %p1250_p0 }
  0x2b   : > { %1260 = shalt.err (!%p1257_p3)
}
  0x2c   : > { %s1690_s3 = sld [smem:[#allocation16_spill]]  ;;  %s1272_s10 = scalar_lea.vmem %s253_s16, 1024 }
  0x2d   : > { %p1273_p10 = scmp.ne.s32.totalorder %s253_s16, %s1272_s10  ;;  %p1280_p9 = scmp.lt.s32.totalorder %s253_s16, %s253_s16 }
  0x2e   : > { %p1281_p13 = scmp.lt.s32.totalorder %s1272_s10, %s1272_s10 }
  0x2f   : > { %p1275_p7 = pnand %p1273_p10, %p1211_p12 }
  0x30   : > { %p1282_p4 = por %p1281_p13, %p1280_p9 }
  0x31   : > { %p1276_p1 = pneg %p1275_p7 }
  0x32   : > { %1114 = dma.hbm_to_vmem [thread:$0]  (!%p1487_p11), %s1690_s3, 2048, %s237_s14, [#allocation6], %s1392_s18, %s1392_s18, %s1393_s19  }
  0x33   : > { %p1283_p2 = pnand %p1282_p4, %p1276_p1 }
  0x35   : > { %1286 = shalt.err (!%p1283_p2)
}
  0x36   : > { %1117 = dma.hbm_to_vmem [thread:$0]  (!%p1487_p11), %s1676_s5, 1024, %s253_s16, [#allocation9], %s1392_s18, %s1392_s18, %s1393_s19  }
  0x37   : > { %s1518_s14 = sadd.s32 1, %s1387_s27   ;;  %s32_s12 = sadd.s32 1, %s1383_s26 }
  0x38   : > { %s29_s15 = ssub.s32 %s1387_s27, %s1518_s14  ;;  %p39_p6 = scmp.ne.s32.totalorder %s1383_s26, %s1379_s25 }
  0x39   : > { %p30_p4 = scmp.eq.s32.totalorder %s29_s15, 0  ;;  %p40_p12 = scmp.eq.s32.totalorder %s1387_s27, 0 }
  0x3a   : > { %p1129_p0 = scmp.lt.s32.totalorder %s1387_s27, 2  ;;  %p1691_p3 = scmp.eq.s32.totalorder %s1459_s28, 1 }
  0x3b   : > { %s1528_s17 = scalar_select %p30_p4, %s1383_s26, %s32_s12  }
  0x3c   : > { %p41_p5 = por %p40_p12, %p39_p6  ;;  %p1532_p10 = por %p1691_p3, %p39_p6 }
  0x3d   : > { %s269_s21 = sand.u32 1, %s1383_s26   ;;  %s928_s22 = sshll.u32 %s1387_s27, 6 }
  0x3e   : > { %s1692_s20 = scalar_select %p1532_p10, 1, 0 }
  0x3f   : > { %s927_s16 = sshll.u32 %s269_s21, 2  ;;  %s1541_s23 = scalar_lea.hbm %s1671_s0, %s928_s22 }
  0x40   : > { %s273_s29 = scalar_lea.vmem [#allocation2], %s927_s16  ;;  %p1543_p11 = pnand %p1129_p0, %p41_p5 }
  0x41   : > { %s280_s10 = sshll.u32 %s273_s29, 4  ;;  %s270_s13 = scalar_lea.sflag [#allocation3], %s269_s21  ;;  %s281_s10 = int_to_ptr.vmem [resolvable:$true] %s280_s10 }
  0x42   : > { %s1287_s15 = scalar_lea.hbm %s1541_s23, 64  ;;  %p1289_p1 = pneg %p1543_p11 }
  0x43   : > { %p1288_p7 = scmp.ne.s32.totalorder %s1541_s23, %s1287_s15  ;;  %s1292_s18 = scalar_lea.hbm %s1671_s0, 128 }
  0x44   : > { %p1293_p2 = scmp.lt.s32.totalorder %s1541_s23, %s1671_s0  ;;  %p1294_p4 = scmp.lt.s32.totalorder %s1292_s18, %s1287_s15 }
  0x45   : > { %p1290_p9 = pnand %p1289_p1, %p1288_p7 }
  0x46   : > { %p1295_p6 = por %p1294_p4, %p1293_p2 }
  0x47   : > { %p1291_p13 = pneg %p1290_p9 }
  0x49   : > { %p1296_p12 = pnand %p1295_p6, %p1291_p13 }
  0x4b   : > { %1299 = shalt.err (!%p1296_p12)
}
  0x4c   : > { %s1300_s29 = scalar_lea.vmem %s281_s10, 64  ;;  %s1394_s21 = smov [#allocation2]  }
  0x4d   : > { %p1301_p0 = scmp.ne.s32.totalorder %s281_s10, %s1300_s29  ;;  %s1305_s1 = sshll.u32 %s1394_s21, 4  ;;  %s1306_s1 = int_to_ptr.vmem [resolvable:$false] %s1305_s1 }
  0x4e   : > { %s1307_s3 = scalar_lea.vmem %s1306_s1, 128  ;;  %p1308_p7 = scmp.lt.s32.totalorder %s281_s10, %s1306_s1 }
  0x4f   : > { %p1303_p5 = pnand %p1301_p0, %p1289_p1  ;;  %p1309_p9 = scmp.lt.s32.totalorder %s1307_s3, %s1300_s29 }
  0x51   : > { %p1304_p3 = pneg %p1303_p5  ;;  %p1310_p10 = por %p1309_p9, %p1308_p7 }
  0x53   : > { %p1311_p8 = pnand %p1310_p10, %p1304_p3 }
  0x55   : > { %1314 = shalt.err (!%p1311_p8)
}
  0x56   : > { %1121 = dma.hbm_to_vmem [thread:$0]  (!%p1543_p11), %s1541_s23, 64, %s281_s10, %s270_s13  }
  0x57   : > { %p1694_p13 = scmp.ne.s32.totalorder %s1687_s9, 0 }
  0x58   : > { %s1564_s15 = sand.u32 (!%p1694_p13), 1, %s1379_s25   ;;  %p1695_p1 = scmp.ne.s32.totalorder (!%p1694_p13), %s1685_s30, 0 }
  0x59   : > { %289 = sbr.rel (%p1694_p13) target bundleno = 1255 (0x4e7), region = 48  ;;  %s930_s12 = sshll.u32 (!%p1694_p13), %s1564_s15, 2 }
  0x5a   : > { %s292_s22 = scalar_lea.sflag (!%p1694_p13), [#allocation3], %s1564_s15  ;;  %s1568_s1 = scalar_lea.vmem (!%p1694_p13), [#allocation2], %s930_s12 }
  0x5e   : > { %1358 = dma.done.wait (%p1695_p1), %s292_s22, 64  }
  0x5f   : > { %1360 = vsyncadd (%p1695_p1), %s292_s22, 4294967232  ;;  %p1696_p8 = scmp.eq.s32.totalorder %s1459_s28, 0 }
  0x61   : > { %1362 = dma.done.wait (%p1696_p8), [#allocation6], 3072   ;;  %p1697_p10 = pmov %p1696_p8 }
  0x62   : > { %p1698_p11 = pmov %p1696_p8 }
  0x63   : > { %1364 = vsyncadd (%p1697_p10), [#allocation6], 4294964224 }
  0x64   : > { %1366 = dma.done.wait (%p1698_p11), [#allocation9], 1024   ;;  %p1699_p2 = pmov %p1696_p8 }
  0x65   : > { %v1395_v0 = vmov 0.0   ;;  %vm1396_vm0 = vmmov 0   ;;  %v1173_v1 = vld [vmem:[#allocation5 + $0x38] sm:$0xff]   ;;  %v1174_v2 = vld [vmem:[#allocation5 + $0x30] sm:$0xff]   ;;  %v1175_v3 = vld [vmem:[#allocation5 + $0x28] sm:$0xff]   ;;  %v794_v60 = vlaneseq  ;;  %s934_s19 = sshll.u32 %s1564_s15, 3 }
  0x66   : > { %1368 = vsyncadd (%p1699_p2), [#allocation9], 4294966272  ;;  %1012 = vmatprep.subr.bf16.mxu0 %v1395_v0  ;;  %1028 = vmatprep.mubr.msk.bf16.mxu0 %vm1396_vm0, %v1395_v0  ;;  %v1181_v4 = vld [vmem:[#allocation7 + $0x38] sm:$0xff]   ;;  %v1176_v5 = vld [vmem:[#allocation5 + $0x20] sm:$0xff]   ;;  %s973_s16 = sshll.u32 %s1459_s28, 7  ;;  %s337_s29 = scalar_lea.vmem [#allocation10], %s934_s19 }
  0x67   : > { %1032 = vmatprep.subr.bf16.mxu1 %v1395_v0  ;;  %1048 = vmatprep.mubr.msk.bf16.mxu1 %vm1396_vm0, %v1395_v0  ;;  %v1182_v6 = vld [vmem:[#allocation7 + $0x30] sm:$0xff]   ;;  %v1177_v7 = vld [vmem:[#allocation5 + $0x18] sm:$0xff]   ;;  %v1183_v8 = vld [vmem:[#allocation7 + $0x28] sm:$0xff]   ;;  %v795_v61 = vand.u32 127, %v794_v60  ;;  %s822_s21 = sshll.u32 %s337_s29, 4  ;;  %s809_s3 = scalar_lea.sflag [#allocation4], %s1564_s15  ;;  %s823_s21 = int_to_ptr.vmem [resolvable:$true] %s822_s21 }
  0x68   : > { %1013 = vmatpush3.bf16.msra.mxu0 %v1173_v1  ;;  %1033 = vmatpush3.bf16.msra.mxu1 %v1181_v4  ;;  %v1178_v9 = vld [vmem:[#allocation5 + $0x10] sm:$0xff]   ;;  %v1184_v10 = vld [vmem:[#allocation7 + $0x20] sm:$0xff]   ;;  %v1179_v11 = vld [vmem:[#allocation5 + $0x8] sm:$0xff]   ;;  %s1315_s30 = scalar_lea.vmem %s823_s21, 128  ;;  %p1700_p6 = scmp.ne.s32.totalorder %s1692_s20, 0 }
  0x69   : > { %1014 = vmatprep.subr.bf16.mxu0 %v1395_v0  ;;  %1034 = vmatprep.subr.bf16.mxu1 %v1395_v0  ;;  %v1185_v12 = vld [vmem:[#allocation7 + $0x18] sm:$0xff]   ;;  %v1180_v13 = vld [vmem:[#allocation5] sm:$0xff]   ;;  %v1186_v14 = vld [vmem:[#allocation7 + $0x10] sm:$0xff]   ;;  %vm796_vm1 = vcmp.lt.s32.totalorder %v795_v61, 4  ;;  %p1316_p4 = scmp.ne.s32.totalorder %s823_s21, %s1315_s30  ;;  %s1397_s9 = smov [#allocation10]  }
  0x6a   : > { %v339_v15 = vld [vmem:[%s1568_s1] sm:$0xf]  ;;  %v1187_v16 = vld [vmem:[#allocation7 + $0x8] sm:$0xff]   ;;  %v1188_v17 = vld [vmem:[#allocation7] sm:$0xff]   ;;  %s820_s1 = scalar_lea.hbm %s1678_s7, %s973_s16  ;;  %s1319_s23 = sshll.u32 %s1397_s9, 4  ;;  %s1320_s23 = int_to_ptr.vmem [resolvable:$false] %s1319_s23 }
  0x6b   : > { %v1189_v18 = vld [vmem:[#allocation7 + $0x78] sm:$0xff]   ;;  %v1190_v19 = vld [vmem:[#allocation7 + $0x70] sm:$0xff]   ;;  %v1191_v20 = vld [vmem:[#allocation7 + $0x68] sm:$0xff]   ;;  %p1317_p12 = pnand %p1316_p4, %p1700_p6  ;;  %s1321_s28 = scalar_lea.vmem %s1320_s23, 256 }
  0x6c   : > { %1015 = vmatpush3.bf16.msra.mxu0 %v1174_v2  ;;  %1035 = vmatpush3.bf16.msra.mxu1 %v1182_v6  ;;  %v1192_v21 = vld [vmem:[#allocation7 + $0x60] sm:$0xff]   ;;  %v1193_v22 = vld [vmem:[#allocation7 + $0x58] sm:$0xff]   ;;  %v1194_v23 = vld [vmem:[#allocation7 + $0x50] sm:$0xff]   ;;  %p1322_p5 = scmp.lt.s32.totalorder %s823_s21, %s1320_s23  ;;  %p1323_p3 = scmp.lt.s32.totalorder %s1321_s28, %s1315_s30 }
  0x6d   : > { %1016 = vmatprep.subr.bf16.mxu0 %v1395_v0  ;;  %1036 = vmatprep.subr.bf16.mxu1 %v1395_v0  ;;  %v935_v24 = vld [vmem:[%s1673_s2] ss:$0 sm:$0xff]  ;;  %v1195_v32 = vld [vmem:[#allocation7 + $0x48] sm:$0xff]   ;;  %v1196_v33 = vld [vmem:[#allocation7 + $0x40] sm:$0xff]   ;;  %p1318_p0 = pneg %p1317_p12 }
  0x6e   : > { %v1197_v34 = vld [vmem:[#allocation8 + $0x38] sm:$0xff]   ;;  %v1198_v35 = vld [vmem:[#allocation8 + $0x30] sm:$0xff]   ;;  %v1199_v36 = vld [vmem:[#allocation8 + $0x28] sm:$0xff]   ;;  %p1324_p7 = por %p1323_p3, %p1322_p5 }
  0x6f   : > { %v1200_v37 = vld [vmem:[#allocation8 + $0x20] sm:$0xff]   ;;  %v1201_v38 = vld [vmem:[#allocation8 + $0x18] sm:$0xff]   ;;  %v1202_v39 = vld [vmem:[#allocation8 + $0x10] sm:$0xff]  }
  0x70   : > { %1017 = vmatpush3.bf16.msra.mxu0 %v1175_v3  ;;  %1037 = vmatpush3.bf16.msra.mxu1 %v1183_v8  ;;  %v944_v40 = vld [vmem:[%s1675_s4] ss:$0 sm:$0xff]  ;;  %v1203_v49 = vld [vmem:[#allocation8 + $0x8] sm:$0xff]   ;;  %v1204_v50 = vld [vmem:[#allocation8] sm:$0xff]   ;;  %p1325_p9 = pnand %p1324_p7, %p1318_p0 }
  0x71   : > { %1018 = vmatprep.subr.bf16.mxu0 %v1395_v0  ;;  %1038 = vmatprep.subr.bf16.mxu1 %v1395_v0  ;;  %v954_v51 = vld [vmem:[%s1675_s4 + $0x1] ss:$0 sm:$0xff]  ;;  %v963_v62 = vld [vmem:[%s1677_s6] ss:$0 sm:$0xff] }
  0x74   : > { %1019 = vmatpush3.bf16.msra.mxu0 %v1176_v5  ;;  %1039 = vmatpush3.bf16.msra.mxu1 %v1184_v10 }
  0x75   : > { %1020 = vmatprep.subr.bf16.mxu0 %v1395_v0  ;;  %1040 = vmatprep.subr.bf16.mxu1 %v1395_v0 }
  0x78   : > { %1021 = vmatpush3.bf16.msra.mxu0 %v1177_v7  ;;  %1041 = vmatpush3.bf16.msra.mxu1 %v1185_v12 }
  0x79   : > { %1022 = vmatprep.subr.bf16.mxu0 %v1395_v0  ;;  %1042 = vmatprep.subr.bf16.mxu1 %v1395_v0 }
  0x7c   : > { %1023 = vmatpush3.bf16.msra.mxu0 %v1178_v9  ;;  %1043 = vmatpush3.bf16.msra.mxu1 %v1186_v14 }
  0x7d   : > { %1024 = vmatprep.subr.bf16.mxu0 %v1395_v0  ;;  %1044 = vmatprep.subr.bf16.mxu1 %v1395_v0 }
  0x80   : > { %1025 = vmatpush3.bf16.msra.mxu0 %v1179_v11  ;;  %1045 = vmatpush3.bf16.msra.mxu1 %v1187_v16 }
  0x81   : > { %1026 = vmatprep.subr.bf16.mxu0 %v1395_v0  ;;  %1046 = vmatprep.subr.bf16.mxu1 %v1395_v0 }
  0x84   : > { %1027 = vmatpush3.bf16.msra.mxu0 %v1180_v13  ;;  %1047 = vmatpush3.bf16.msra.mxu1 %v1188_v17 }
  0x85   : > { %1052 = vmatprep.subr.bf16.mxu0 %v1395_v0  ;;  %1072 = vmatprep.subr.bf16.mxu1 %v1395_v0 }
  0x87   : > { %1029 = vmatmul.mubr.bf16.vlgmr.msra.gmra.mxu0 %v339_v15 }
  0x88   : > { %1068 = vmatprep.mubr.msk.bf16.mxu0 %vm1396_vm0, %v1395_v0  ;;  %1053 = vmatpush3.bf16.msra.mxu0 %v1189_v18 }
  0x89   : > { %1054 = vmatprep.subr.bf16.mxu0 %v1395_v0 }
  0x8c   : > { %1055 = vmatpush3.bf16.msra.mxu0 %v1190_v19 }
  0x8d   : > { %1056 = vmatprep.subr.bf16.mxu0 %v1395_v0 }
  0x90   : > { %1057 = vmatpush3.bf16.msra.mxu0 %v1191_v20 }
  0x91   : > { %1058 = vmatprep.subr.bf16.mxu0 %v1395_v0 }
  0x94   : > { %1059 = vmatpush3.bf16.msra.mxu0 %v1192_v21 }
  0x95   : > { %1060 = vmatprep.subr.bf16.mxu0 %v1395_v0 }
  0x98   : > { %1061 = vmatpush3.bf16.msra.mxu0 %v1193_v22 }
  0x99   : > { %1062 = vmatprep.subr.bf16.mxu0 %v1395_v0 }
  0x9c   : > { %1063 = vmatpush3.bf16.msra.mxu0 %v1194_v23 }
  0x9d   : > { %1064 = vmatprep.subr.bf16.mxu0 %v1395_v0 }
  0xa0   : > { %1065 = vmatpush3.bf16.msra.mxu0 %v1195_v32 }
  0xa1   : > { %1066 = vmatprep.subr.bf16.mxu0 %v1395_v0 }
  0xa4   : > { %1067 = vmatpush3.bf16.msra.mxu0 %v1196_v33 }
 0x147   : > { %v445_v25 = vpop.f32.mrf.mxu0 }
 0x148   : > { %v446_v26 = vadd.f32 %v935_v24, %v445_v25 }
 0x149   : > { %v1030_v27 = vpop.f32.mrf.mxu0 }
 0x14a   : > { %v451_v28 = vmax.f32 %v446_v26, 0.0 }
 0x14b   : > { %v448_v29 = vpop.f32.mrf.mxu0 }
 0x14c   : > { %v452_v30 = vpack.c.bf16 %v451_v28, %v451_v28 }
 0x14d   : > { %v1031_v31 = vpop.f32.mrf.mxu0 }
 0x14e   : > { %1049 = vmatmul.mubr.bf16.vlgmr.msra.gmra.mxu1 %v452_v30 }
 0x14f   : > { %1088 = vmatprep.mubr.msk.bf16.mxu1 %vm1396_vm0, %v1395_v0  ;;  %1073 = vmatpush3.bf16.msra.mxu1 %v1197_v34 }
 0x150   : > { %1074 = vmatprep.subr.bf16.mxu1 %v1395_v0 }
 0x153   : > { %1075 = vmatpush3.bf16.msra.mxu1 %v1198_v35 }
 0x154   : > { %1076 = vmatprep.subr.bf16.mxu1 %v1395_v0 }
 0x157   : > { %1077 = vmatpush3.bf16.msra.mxu1 %v1199_v36 }
 0x158   : > { %1078 = vmatprep.subr.bf16.mxu1 %v1395_v0 }
 0x15b   : > { %1079 = vmatpush3.bf16.msra.mxu1 %v1200_v37 }
 0x15c   : > { %1080 = vmatprep.subr.bf16.mxu1 %v1395_v0 }
 0x15f   : > { %1081 = vmatpush3.bf16.msra.mxu1 %v1201_v38 }
 0x160   : > { %1082 = vmatprep.subr.bf16.mxu1 %v1395_v0 }
 0x163   : > { %1083 = vmatpush3.bf16.msra.mxu1 %v1202_v39 }
 0x164   : > { %1084 = vmatprep.subr.bf16.mxu1 %v1395_v0 }
 0x167   : > { %1085 = vmatpush3.bf16.msra.mxu1 %v1203_v49 }
 0x168   : > { %1086 = vmatprep.subr.bf16.mxu1 %v1395_v0 }
 0x16b   : > { %1087 = vmatpush3.bf16.msra.mxu1 %v1204_v50 }
 0x20e   : > { %v558_v41 = vpop.f32.mrf.mxu1 }
 0x20f   : > { %v559_v42 = vadd.f32 %v944_v40, %v558_v41 }
 0x210   : > { %v1050_v43 = vpop.f32.mrf.mxu1 }
 0x211   : > { %v564_v44 = vadd.f32 %v559_v42, %v451_v28 }
 0x212   : > { %v561_v45 = vpop.f32.mrf.mxu1 }
 0x213   : > { %v565_v46 = vmax.f32 %v564_v44, 0.0 }
 0x214   : > { %v1051_v47 = vpop.f32.mrf.mxu1 }
 0x215   : > { %v566_v48 = vpack.c.bf16 %v565_v46, %v565_v46 }
 0x217   : > { %1069 = vmatmul.mubr.bf16.vlgmr.msra.gmra.mxu0 %v566_v48 }
 0x2d7   : > { %v674_v52 = vpop.f32.mrf.mxu0 }
 0x2d8   : > { %v675_v53 = vadd.f32 %v954_v51, %v674_v52 }
 0x2d9   : > { %v1070_v54 = vpop.f32.mrf.mxu0 }
 0x2da   : > { %v680_v55 = vadd.f32 %v675_v53, %v565_v46 }
 0x2db   : > { %v677_v56 = vpop.f32.mrf.mxu0 }
 0x2dc   : > { %v681_v57 = vmax.f32 %v680_v55, 0.0 }
 0x2dd   : > { %v1071_v58 = vpop.f32.mrf.mxu0 }
 0x2de   : > { %v682_v59 = vpack.c.bf16 %v681_v57, %v681_v57 }
 0x2e0   : > { %1089 = vmatmul.mubr.bf16.vlgmr.msra.gmra.mxu1 %v682_v59 }
 0x3a0   : > { %v788_v63 = vpop.f32.mrf.mxu1 }
 0x3a1   : > { %v789_v0 = vadd.f32 %v963_v62, %v788_v63 }
 0x3a2   : > { %v1090_v1 = vpop.f32.mrf.mxu1 }
 0x3a3   : > { %v797_v2 = vsel %vm796_vm1, %v789_v0, -inf }
 0x3a4   : > { %798 = vmax.xlane.f32.xlu0 %v797_v2  ;;  %v791_v3 = vpop.f32.mrf.mxu1 }
 0x3a6   : > { %v1091_v4 = vpop.f32.mrf.mxu1 }
 0x42d   : > { %v799_v5 = vpop.xlane.xlu0 %798 }
 0x42e   : > { %v800_v6 = vsub.f32 %v797_v2, %v799_v5 }
 0x430   : > { %v801_v7 = vmul.f32 1.442695, %v800_v6 }
 0x432   : > { %1205 = vpow2.f32 %v801_v7 }
 0x43f   : > { %v1206_v8 = vpop.eup %1205 }
 0x440   : > { %803 = vadd.xlane.f32.xlu0 %v1206_v8 }
 0x4c9   : > { %v804_v9 = vpop.xlane.xlu0 %803 }
 0x4ca   : > { %1207 = vrcp.f32 %v804_v9 }
 0x4d7   : > { %v1208_v10 = vpop.eup %1207 }
 0x4d8   : > { %v806_v11 = vmul.f32 %v1208_v10, %v1206_v8 }
 0x4da   : > { %807 = vst [vmem:[%s337_s29] sm:$0xff] %v806_v11 }
 0x4db   : > { %1328 = shalt.err (!%p1325_p9)
}
 0x4dc   : > { %s1329_s10 = scalar_lea.hbm %s820_s1, 128  ;;  %s1333_s13 = scalar_lea.hbm %s1678_s7, 256 }
 0x4dd   : > { %p1330_p13 = scmp.ne.s32.totalorder %s820_s1, %s1329_s10  ;;  %p1334_p10 = scmp.lt.s32.totalorder %s820_s1, %s1678_s7 }
 0x4de   : > { %p1335_p11 = scmp.lt.s32.totalorder %s1333_s13, %s1329_s10 }
 0x4df   : > { %p1331_p1 = pnand %p1330_p13, %p1700_p6 }
 0x4e0   : > { %p1336_p2 = por %p1335_p11, %p1334_p10 }
 0x4e1   : > { %p1332_p8 = pneg %p1331_p1 }
 0x4e3   : > { %p1337_p4 = pnand %p1336_p2, %p1332_p8 }
 0x4e5   : > { %1340 = shalt.err (!%p1337_p4)
}
 0x4e6   : > { %1106 = dma.vmem_to_hbm [thread:$0]  (%p1700_p6), %s823_s21, 128, %s820_s1, %s809_s3  }
 0x4e7 PF: > { %s834_s16 = sand.u32 1, %s1375_s24   ;;  %p1701_p12 = scmp.ne.s32.totalorder %s1686_s8, 0 }
 0x4e8   : > { %p1702_p0 = scmp.ge.s32.totalorder %s1387_s27, 2  ;;  %s835_s29 = scalar_lea.sflag [#allocation4], %s834_s16 }
 0x4ea   : > { %p1123_p5 = pnand %p1702_p0, %p1701_p12 }
 0x4ec   : > { %p1124_p3 = pneg %p1123_p5 }
 0x4ee   : > { %1370 = dma.done.wait (%p1124_p3), %s835_s29, 128  }
 0x4ef   : > { %1372 = vsyncadd (%p1124_p3), %s835_s29, 4294967168  ;;  %p22_p7 = scmp.ge.s32.totalorder %s1518_s14, 4   ;;  %s1703_s24 = smov %s1379_s25 }
 0x4f0   : > { %s1704_s25 = smov %s1383_s26  ;;  %s1705_s26 = smov %s1528_s17 }
 0x4f1   : > { %s1706_s27 = smov %s1518_s14  ;;  %24 = sbr.rel (!%p22_p7) target bundleno = 10 (0xa), region = 107 }
 0x4f6   :  { %840 = vsyncpa [#allocation3], 1 }
 0x4f7   :  { %842 = vsyncpa [#allocation3 + $0x1], 1 }
 0x4f8   :  { %843 = vsyncpa [#allocation6], 1 }
 0x4f9   :  { %844 = vsyncpa [#allocation9], 1 }
 0x4fa   :  { %845 = vsyncpa [#allocation4], 1 }
 0x4fb   :  { %847 = vsyncpa [#allocation4 + $0x1], 1 }

</bundles_post_ra>
